<compile_context>
chip_gen: v7x
topology: tpu7x:2x2x1
jax: 0.10.0
libtpu: 0.0.40
codegen_flags: <defaults>
</compile_context>

<pallas_src>
import functools
import math

import jax
import jax.numpy as jnp
from jax.experimental import pallas as pl
from jax.experimental.pallas import tpu as pltpu


# ----------------------------------------------------------------------------
# Single-step kernel (GraphLSTM.forward)
# ----------------------------------------------------------------------------
def graph_lstm_step_kernel(x_ref, h_ref, c_ref, wk_ref, wgx_ref, wgh_ref,
                           bg_ref, nvec_ref, hc_out_ref, gc_out_ref):
    # x, h, c : [B, F]
    # wk      : [F, K*F]     fused graph-conv weights (A_i-masked, pre-T)
    # wgx     : [K*F, 4*F]   gate weights acting on gc  (f|i|o|C along lanes)
    # wgh     : [F, 4*F]     gate weights acting on h
    # bg      : [1, 4*F]
    # nvec    : [1, F]       A_last @ Neighbor_weight  (precomputed)
    B, F = h_ref.shape

    x = x_ref[...]
    h = h_ref[...]
    c = c_ref[...]

    # one MXU push for all K graph convolutions
    gc = jnp.dot(x, wk_ref[...], preferred_element_type=jnp.float32)

    # two accumulating MXU pushes; no scratch / VMEM round-trip
    pre = (jnp.dot(gc, wgx_ref[...], preferred_element_type=jnp.float32)
           + jnp.dot(h, wgh_ref[...], preferred_element_type=jnp.float32)
           + bg_ref[...])

    # 2 EUP pushes over the full [B, 4F] tile; gates sliced afterwards
    sig = jax.nn.sigmoid(pre)
    tnh = jnp.tanh(pre)
    f_gate = sig[:, 0 * F:1 * F]
    i_gate = sig[:, 1 * F:2 * F]
    o_gate = sig[:, 2 * F:3 * F]
    c_cand = tnh[:, 3 * F:4 * F]

    nc = c * nvec_ref[...]                      # Cell_State * (A_last @ w)
    c_new = f_gate * nc + i_gate * c_cand
    h_new = o_gate * jnp.tanh(c_new)

    gc_out_ref[...] = gc.astype(gc_out_ref.dtype)          # lane-dense [B, K*F]
    # single store: [h_new ; c_new] stacked along the sublane axis -> [2B, F]
    hc_out_ref[...] = jnp.concatenate([h_new, c_new],
                                      axis=0).astype(hc_out_ref.dtype)


@jax.jit
def graph_lstm_step(x, hidden, cell, wk_wide, wg_x, wg_h, bg_fused, nvec):
    B, F = x.shape
    KF = wk_wide.shape[1]
    vmem = pl.BlockSpec(memory_space=pltpu.MemorySpace.VMEM)
    hc, gc = pl.pallas_call(
        graph_lstm_step_kernel,
        out_shape=(
            jax.ShapeDtypeStruct((2 * B, F), jnp.float32),   # [Hidden ; Cell]
            jax.ShapeDtypeStruct((B, KF), jnp.float32),      # gc (torch concat)
        ),
        in_specs=[vmem] * 8,
        out_specs=(vmem, vmem),
    )(x, hidden, cell, wk_wide, wg_x, wg_h, bg_fused, nvec)
    return hc[:B], hc[B:], gc


# ----------------------------------------------------------------------------
# Sequence kernel (GraphLSTM.loop): chunked time grid, recurrence inside.
# ----------------------------------------------------------------------------
def graph_lstm_seq_kernel(x_ref, wxe_ref, wgh_ref, bg_ref, nvec_ref,
                          h_ref, c_ref, *, t_chunk):
    # x_ref  : [T_chunk*B, F]   timestep-major chunk of inputs
    # wxe    : [F, 4F]          precombined wk_wide @ Wg_x
    # wgh    : [F, 4F]          recurrent gate weights
    # bg     : [1, 4F]
    # nvec   : [1, F]
    # h_ref/c_ref : [B, F] resident carries (constant out index_map)
    chunk = pl.program_id(0)
    B, F = h_ref.shape

    @pl.when(chunk == 0)
    def _():                                   # initHidden: zeros
        h_ref[...] = jnp.zeros_like(h_ref)
        c_ref[...] = jnp.zeros_like(c_ref)

    # x-side gate pre-activations for the whole chunk in ONE matmul
    # (M = T_chunk*B rows; this work is off the serial h->h chain).
    pre_x = (jnp.dot(x_ref[...], wxe_ref[...],
                     preferred_element_type=jnp.float32) + bg_ref[...])

    wgh = wgh_ref[...]
    nvec = nvec_ref[...]
    h = h_ref[...]
    c = c_ref[...]

    # unrolled recurrence: only h @ Wg_h remains per step
    for t in range(t_chunk):
        pre = pre_x[t * B:(t + 1) * B, :] + jnp.dot(
            h, wgh, preferred_element_type=jnp.float32)
        sig = jax.nn.sigmoid(pre)
        tnh = jnp.tanh(pre)
        f_gate = sig[:, 0 * F:1 * F]
        i_gate = sig[:, 1 * F:2 * F]
        o_gate = sig[:, 2 * F:3 * F]
        c_cand = tnh[:, 3 * F:4 * F]
        c = f_gate * (c * nvec) + i_gate * c_cand
        h = o_gate * jnp.tanh(c)

    h_ref[...] = h.astype(h_ref.dtype)
    c_ref[...] = c.astype(c_ref.dtype)


@functools.partial(jax.jit, static_argnames=("t_chunk",))
def graph_lstm_loop(x_seq, wk_wide, wg_x, wg_h, bg_fused, nvec, *, t_chunk=8):
    # x_seq: [B, T, F] (torch layout)
    B, T, F = x_seq.shape
    assert T % t_chunk == 0, "T must be a multiple of t_chunk"
    n_chunks = T // t_chunk

    # hoist the x-dependent matmul out of the recurrence:
    #   (x @ wk_wide) @ Wg_x == x @ (wk_wide @ Wg_x)
    wxe = jnp.dot(wk_wide, wg_x, precision=jax.lax.Precision.HIGHEST)

    # [B,T,F] -> [T,B,F] -> [T*B, F]: timestep-major, full-F lane layout
    x_flat = jnp.transpose(x_seq, (1, 0, 2)).reshape(T * B, F)

    def const2d(shape):
        return pl.BlockSpec(shape, lambda c: (0, 0))      # resident weights

    h, c = pl.pallas_call(
        functools.partial(graph_lstm_seq_kernel, t_chunk=t_chunk),
        out_shape=(jax.ShapeDtypeStruct((B, F), jnp.float32),
                   jax.ShapeDtypeStruct((B, F), jnp.float32)),
        grid_spec=pltpu.PrefetchScalarGridSpec(
            num_scalar_prefetch=0,
            grid=(n_chunks,),
            in_specs=[
                pl.BlockSpec((t_chunk * B, F), lambda c: (c, 0)),  # x chunk
                const2d(wxe.shape),
                const2d(wg_h.shape),
                const2d(bg_fused.shape),
                const2d(nvec.shape),
            ],
            out_specs=(
                pl.BlockSpec((B, F), lambda c: (0, 0)),   # Hidden_State carry
                pl.BlockSpec((B, F), lambda c: (0, 0)),   # Cell_State carry
            ),
        ),
        compiler_params=pltpu.CompilerParams(
            dimension_semantics=("arbitrary",)),
    )(x_flat, wxe, wg_h, bg_fused, nvec)
    return h, c


# ----------------------------------------------------------------------------
# Parameter construction (mirrors the torch __init__, pre-packed for fusion)
# ----------------------------------------------------------------------------
def build_params(key, K, F, A, FFR, clamp_a=True):
    # A_list: A_temp = I; repeat K times: A_temp @= A ; clamp(max=1) ; * FFR
    a_list = []
    a_temp = jnp.eye(F, dtype=jnp.float32)
    for _ in range(K):
        a_temp = a_temp @ A
        if clamp_a:
            a_temp = jnp.minimum(a_temp, 1.0)     # torch.clamp(max=1.0)
        a_list.append(a_temp * FFR)

    keys = jax.random.split(key, K + 2 * 4 + 1)

    # FilterLinear: effective op is x @ (A_i * W_i)^T; fuse K along lanes
    stdv = 1.0 / math.sqrt(F)
    wk_cols = []
    for i in range(K):
        w = jax.random.uniform(keys[i], (F, F), jnp.float32, -stdv, stdv)
        wk_cols.append((a_list[i] * w).T)
    wk_wide = jnp.concatenate(wk_cols, axis=1)           # [F, K*F]

    # Gate linears (order f, i, o, C): torch weight [F, (K+1)F], bias [F]
    in_dim = K * F + F
    stdv_g = 1.0 / math.sqrt(in_dim)
    wg_cols, bg_cols = [], []
    for g in range(4):
        w = jax.random.uniform(keys[K + 2 * g], (F, in_dim), jnp.float32,
                               -stdv_g, stdv_g)
        b = jax.random.uniform(keys[K + 2 * g + 1], (F,), jnp.float32,
                               -stdv_g, stdv_g)
        wg_cols.append(w.T)                              # [(K+1)F, F]
        bg_cols.append(b)
    wg_fused = jnp.concatenate(wg_cols, axis=1)          # [(K+1)F, 4F]
    bg_fused = jnp.concatenate(bg_cols).reshape(1, 4 * F)
    wg_x = wg_fused[:K * F, :]                           # [K*F, 4F]  (gc part)
    wg_h = wg_fused[K * F:, :]                           # [F, 4F]    (h part)

    # Neighbor_weight ~ U(-1/sqrt(F), 1/sqrt(F)); hoist A_last @ w to a row vec
    nw = jax.random.uniform(keys[-1], (F,), jnp.float32, -stdv, stdv)
    nvec = (a_list[-1] @ nw).reshape(1, F)               # [1, F]
    return wk_wide, wg_x, wg_h, bg_fused, nvec


# ----------------------------------------------------------------------------
# Pure-JAX reference (mirrors the torch forward)
# ----------------------------------------------------------------------------
def reference_step(x, h, c, wk_wide, wg_x, wg_h, bg_fused, nvec):
    F = x.shape[1]
    gc = x @ wk_wide
    pre = gc @ wg_x + h @ wg_h + bg_fused
    f = jax.nn.sigmoid(pre[:, 0 * F:1 * F])
    i = jax.nn.sigmoid(pre[:, 1 * F:2 * F])
    o = jax.nn.sigmoid(pre[:, 2 * F:3 * F])
    Cc = jnp.tanh(pre[:, 3 * F:4 * F])
    c_new = f * (c * nvec) + i * Cc
    h_new = o * jnp.tanh(c_new)
    return h_new, c_new, gc


# ----------------------------------------------------------------------------
if __name__ == "__main__":
    K = 3
    F = 32           # feature_size == hidden_size
    B = 8            # batch
    T = 16           # sequence length for loop()
    T_CHUNK = 8      # timesteps per grid step in the sequence kernel

    key = jax.random.PRNGKey(0)
    k_a, k_ffr, k_x, k_seq, k_p = jax.random.split(key, 5)

    # synthetic adjacency / free-flow reachability matrices
    A = (jax.random.uniform(k_a, (F, F)) > 0.7).astype(jnp.float32)
    FFR = (jax.random.uniform(k_ffr, (F, F)) > 0.3).astype(jnp.float32)

    wk_wide, wg_x, wg_h, bg_fused, nvec = build_params(k_p, K, F, A, FFR)

    x = jax.random.normal(k_x, (B, F), jnp.float32)
    hidden = jnp.zeros((B, F), jnp.float32)   # initHidden
    cell = jnp.zeros((B, F), jnp.float32)

    # --- single forward step ------------------------------------------------
    h_new, c_new, gc = graph_lstm_step(x, hidden, cell, wk_wide, wg_x, wg_h,
                                       bg_fused, nvec)
    jax.block_until_ready((h_new, c_new, gc))

    h_ref, c_ref, gc_ref = reference_step(x, hidden, cell, wk_wide, wg_x,
                                          wg_h, bg_fused, nvec)
    assert jnp.allclose(h_new, h_ref, atol=1e-4), "Hidden_State mismatch"
    assert jnp.allclose(c_new, c_ref, atol=1e-4), "Cell_State mismatch"
    assert jnp.allclose(gc, gc_ref, atol=1e-4), "gc mismatch"

    # --- full recurrence (GraphLSTM.loop): T steps, chunked time grid --------
    x_seq = jax.random.normal(k_seq, (B, T, F), jnp.float32)
    h_T, c_T = graph_lstm_loop(x_seq, wk_wide, wg_x, wg_h, bg_fused, nvec,
                               t_chunk=T_CHUNK)
    jax.block_until_ready((h_T, c_T))

    hr = jnp.zeros((B, F), jnp.float32)
    cr = jnp.zeros((B, F), jnp.float32)
    for t in range(T):
        hr, cr, _ = reference_step(x_seq[:, t, :], hr, cr, wk_wide, wg_x,
                                   wg_h, bg_fused, nvec)
    # looser tolerance: the kernel uses the precombined x-weight (different FP
    # association) and TPU matmul precision differences accumulate over T steps
    assert jnp.allclose(h_T, hr, atol=5e-3), "loop Hidden_State mismatch"
    assert jnp.allclose(c_T, cr, atol=5e-3), "loop Cell_State mismatch"

    print("KERNEL_OK")
</pallas_src>

<mosaic_0001>
module attributes {stable_mosaic.version = 11 : i64} {
  func.func @graph_lstm_step_kernel(%arg0: memref<8x32xf32, #tpu.memory_space<vmem>>, %arg1: memref<8x32xf32, #tpu.memory_space<vmem>>, %arg2: memref<8x32xf32, #tpu.memory_space<vmem>>, %arg3: memref<32x96xf32, #tpu.memory_space<vmem>>, %arg4: memref<96x128xf32, #tpu.memory_space<vmem>>, %arg5: memref<32x128xf32, #tpu.memory_space<vmem>>, %arg6: memref<1x128xf32, #tpu.memory_space<vmem>>, %arg7: memref<1x32xf32, #tpu.memory_space<vmem>>, %arg8: memref<16x32xf32, #tpu.memory_space<vmem>>, %arg9: memref<8x96xf32, #tpu.memory_space<vmem>>) attributes {dimension_semantics = [], scalar_prefetch = 0 : i64, scratch_operands = 0 : i64, tpu.core_type = #tpu.core_type<tc>} {
    %c0 = arith.constant 0 : index
    %c0_0 = arith.constant 0 : index
    %0 = vector.load %arg0[%c0, %c0_0] : memref<8x32xf32, #tpu.memory_space<vmem>>, vector<8x32xf32>
    %c0_1 = arith.constant 0 : index
    %c0_2 = arith.constant 0 : index
    %1 = vector.load %arg1[%c0_1, %c0_2] : memref<8x32xf32, #tpu.memory_space<vmem>>, vector<8x32xf32>
    %c0_3 = arith.constant 0 : index
    %c0_4 = arith.constant 0 : index
    %2 = vector.load %arg2[%c0_3, %c0_4] : memref<8x32xf32, #tpu.memory_space<vmem>>, vector<8x32xf32>
    %c0_5 = arith.constant 0 : index
    %c0_6 = arith.constant 0 : index
    %3 = vector.load %arg3[%c0_5, %c0_6] : memref<32x96xf32, #tpu.memory_space<vmem>>, vector<32x96xf32>
    %cst = arith.constant dense<0.000000e+00> : vector<8x96xf32>
    %4 = tpu.matmul %0, %3, %cst {dimension_numbers = #tpu.dot_dimension_numbers<[1], [0], [0], [1], [0, 0, 1, 1], [], []>} : vector<8x32xf32>, vector<32x96xf32>, vector<8x96xf32> -> vector<8x96xf32>
    %c0_7 = arith.constant 0 : index
    %c0_8 = arith.constant 0 : index
    %5 = vector.load %arg4[%c0_7, %c0_8] : memref<96x128xf32, #tpu.memory_space<vmem>>, vector<96x128xf32>
    %cst_9 = arith.constant dense<0.000000e+00> : vector<8x128xf32>
    %6 = tpu.matmul %4, %5, %cst_9 {dimension_numbers = #tpu.dot_dimension_numbers<[1], [0], [0], [1], [0, 0, 1, 1], [], []>} : vector<8x96xf32>, vector<96x128xf32>, vector<8x128xf32> -> vector<8x128xf32>
    %c0_10 = arith.constant 0 : index
    %c0_11 = arith.constant 0 : index
    %7 = vector.load %arg5[%c0_10, %c0_11] : memref<32x128xf32, #tpu.memory_space<vmem>>, vector<32x128xf32>
    %cst_12 = arith.constant dense<0.000000e+00> : vector<8x128xf32>
    %8 = tpu.matmul %1, %7, %cst_12 {dimension_numbers = #tpu.dot_dimension_numbers<[1], [0], [0], [1], [0, 0, 1, 1], [], []>} : vector<8x32xf32>, vector<32x128xf32>, vector<8x128xf32> -> vector<8x128xf32>
    %9 = arith.addf %6, %8 : vector<8x128xf32>
    %c0_13 = arith.constant 0 : index
    %c0_14 = arith.constant 0 : index
    %10 = vector.load %arg6[%c0_13, %c0_14] : memref<1x128xf32, #tpu.memory_space<vmem>>, vector<1x128xf32>
    %11 = vector.broadcast %10 : vector<1x128xf32> to vector<8x128xf32>
    %12 = arith.addf %9, %11 : vector<8x128xf32>
    %13 = arith.negf %12 : vector<8x128xf32>
    %14 = math.exp %13 : vector<8x128xf32>
    %cst_15 = arith.constant 1.000000e+00 : f32
    %15 = vector.broadcast %cst_15 : f32 to vector<8x128xf32>
    %16 = arith.addf %15, %14 : vector<8x128xf32>
    %17 = arith.divf %15, %16 : vector<8x128xf32>
    %18 = math.tanh %12 : vector<8x128xf32>
    %19 = vector.extract_strided_slice %17 {offsets = [0, 0], sizes = [8, 32], strides = [1, 1]} : vector<8x128xf32> to vector<8x32xf32>
    %20 = vector.extract_strided_slice %17 {offsets = [0, 32], sizes = [8, 32], strides = [1, 1]} : vector<8x128xf32> to vector<8x32xf32>
    %21 = vector.extract_strided_slice %17 {offsets = [0, 64], sizes = [8, 32], strides = [1, 1]} : vector<8x128xf32> to vector<8x32xf32>
    %22 = vector.extract_strided_slice %18 {offsets = [0, 96], sizes = [8, 32], strides = [1, 1]} : vector<8x128xf32> to vector<8x32xf32>
    %c0_16 = arith.constant 0 : index
    %c0_17 = arith.constant 0 : index
    %23 = vector.load %arg7[%c0_16, %c0_17] : memref<1x32xf32, #tpu.memory_space<vmem>>, vector<1x32xf32>
    %24 = vector.broadcast %23 : vector<1x32xf32> to vector<8x32xf32>
    %25 = arith.mulf %2, %24 : vector<8x32xf32>
    %26 = arith.mulf %19, %25 : vector<8x32xf32>
    %27 = arith.mulf %20, %22 : vector<8x32xf32>
    %28 = arith.addf %26, %27 : vector<8x32xf32>
    %29 = math.tanh %28 : vector<8x32xf32>
    %30 = arith.mulf %21, %29 : vector<8x32xf32>
    %c0_18 = arith.constant 0 : index
    %c0_19 = arith.constant 0 : index
    %31 = vector.load %arg9[%c0_18, %c0_19] : memref<8x96xf32, #tpu.memory_space<vmem>>, vector<8x96xf32>
    tpu.vector_store %arg9[%c0_18, %c0_19], %4 {strides = array<i32>} : memref<8x96xf32, #tpu.memory_space<vmem>>, vector<8x96xf32>,
    %32 = tpu.concatenate %30, %28 in 0 : vector<8x32xf32>, vector<8x32xf32> -> vector<16x32xf32>
    %c0_20 = arith.constant 0 : index
    %c0_21 = arith.constant 0 : index
    %33 = vector.load %arg8[%c0_20, %c0_21] : memref<16x32xf32, #tpu.memory_space<vmem>>, vector<16x32xf32>
    tpu.vector_store %arg8[%c0_20, %c0_21], %32 {strides = array<i32>} : memref<16x32xf32, #tpu.memory_space<vmem>>, vector<16x32xf32>,
    return
  }
}

</mosaic_0001>

<bundles_post_ra>
// kernel: graph_lstm_step.1
= control target key start
LH: loop header
LB: loop body
LE: loop exit
PB: predicated region body
PF: predicated region fallthrough
CT: control target
= control target key end

     0   :  { %15 = vsyncpa [#allocation3], 0  ;;  %s916_s0 = inlined_call_operand.hbm [shape: f32[8,32], index: 0, kind: input, shape index: {}]   ;;  %s917_s1 = inlined_call_operand.hbm [shape: f32[8,32], index: 1, kind: input, shape index: {}]   ;;  %s918_s2 = inlined_call_operand.hbm [shape: f32[8,32], index: 2, kind: input, shape index: {}]   ;;  %s919_s3 = inlined_call_operand.hbm [shape: f32[32,96], index: 3, kind: input, shape index: {}]   ;;  %s920_s4 = inlined_call_operand.hbm [shape: f32[96,128], index: 4, kind: input, shape index: {}]   ;;  %s921_s5 = inlined_call_operand.hbm [shape: f32[32,128], index: 5, kind: input, shape index: {}]   ;;  %s922_s6 = inlined_call_operand.vmem [shape: f32[1,128], index: 6, kind: input, shape index: {}]   ;;  %s923_s7 = inlined_call_operand.vmem [shape: f32[1,32], index: 7, kind: input, shape index: {}]   ;;  %s924_s8 = inlined_call_operand.vmem [shape: f32[16,32], index: 8, kind: output, shape index: {0}]   ;;  %s925_s9 = inlined_call_operand.hbm [shape: f32[8,96], index: 9, kind: output, shape index: {1}]  }
   0x1   :  { %16 = vsyncpa [#allocation6], 0 }
   0x2   :  { %17 = vsyncpa [#allocation9], 0 }
   0x3   :  { %18 = vsyncpa [#allocation12], 0 }
   0x4   :  { %19 = vsyncpa [#allocation4], 0  ;;  %s721_s30 = smov [#allocation5]   ;;  %s722_s11 = smov [#allocation8]  }
   0x5   :  { %s36_s10 = sshll.u32 %s721_s30, 4  ;;  %s55_s12 = sshll.u32 %s722_s11, 4  ;;  %s37_s10 = int_to_ptr.vmem [resolvable:$true] %s36_s10  ;;  %s785_s12 = int_to_ptr.vmem [resolvable:$true] %s55_s12 }
   0x6   :  { %s557_s15 = scalar_lea.hbm %s917_s1, 128 }
   0x7   :  { %p558_p0 = scmp.ne.s32.totalorder %s917_s1, %s557_s15  ;;  %p561_p1 = scmp.lt.u32.totalorder %s557_s15, %s917_s1 }
   0x9   :  { %p563_p2 = pnand %p561_p1, %p558_p0 }
   0xb   :  { %566 = shalt.err (!%p563_p2)
}
   0xc   :  { %s567_s20 = scalar_lea.vmem %s37_s10, 128  ;;  %p572_p4 = scmp.lt.s32.totalorder %s37_s10, %s37_s10 }
   0xd   :  { %p568_p3 = scmp.ne.s32.totalorder %s37_s10, %s567_s20  ;;  %p573_p5 = scmp.lt.s32.totalorder %s567_s20, %s567_s20 }
   0xf   :  { %p574_p6 = por %p573_p5, %p572_p4 }
  0x11   :  { %p575_p7 = pnand %p574_p6, %p568_p3 }
  0x13   :  { %578 = shalt.err (!%p575_p7)
}
  0x14   :  { %39 = dma.hbm_to_vmem [thread:$0]  %s917_s1, 128, %s37_s10, [#allocation6]  }
  0x15   :  { %s579_s25 = scalar_lea.hbm %s919_s3, 512 }
  0x16   :  { %p580_p8 = scmp.ne.s32.totalorder %s919_s3, %s579_s25  ;;  %p583_p9 = scmp.lt.u32.totalorder %s579_s25, %s919_s3 }
  0x18   :  { %p585_p10 = pnand %p583_p9, %p580_p8 }
  0x1a   :  { %588 = shalt.err (!%p585_p10)
}
  0x1b   :  { %s589_s30 = scalar_lea.vmem %s785_s12, 512  ;;  %p594_p12 = scmp.lt.s32.totalorder %s785_s12, %s785_s12 }
  0x1c   :  { %p590_p11 = scmp.ne.s32.totalorder %s785_s12, %s589_s30  ;;  %p595_p13 = scmp.lt.s32.totalorder %s589_s30, %s589_s30 }
  0x1e   :  { %p596_p0 = por %p595_p13, %p594_p12 }
  0x20   :  { %p597_p1 = pnand %p596_p0, %p590_p11 }
  0x22   :  { %600 = shalt.err (!%p597_p1)
}
  0x23   :  { %s723_s1 = smov 128   ;;  %s724_s10 = smov 8  }
  0x24   :  { %61 = dma.hbm_to_vmem [thread:$0]  %s919_s3, 512, %s785_s12, [#allocation9], %s723_s1, %s723_s1, %s724_s10  }
  0x25   :  { %s725_s14 = smov [#allocation2]   ;;  %s726_s16 = smov [#allocation7]  }
  0x26   :  { %s26_s15 = sshll.u32 %s725_s14, 4  ;;  %s46_s17 = sshll.u32 %s726_s16, 4  ;;  %s27_s15 = int_to_ptr.vmem [resolvable:$true] %s26_s15  ;;  %s47_s17 = int_to_ptr.vmem [resolvable:$true] %s46_s17 }
  0x27   :  { %s601_s20 = scalar_lea.hbm %s916_s0, 128 }
  0x28   :  { %p602_p2 = scmp.ne.s32.totalorder %s916_s0, %s601_s20  ;;  %p605_p3 = scmp.lt.u32.totalorder %s601_s20, %s916_s0 }
  0x2a   :  { %p607_p4 = pnand %p605_p3, %p602_p2 }
  0x2c   :  { %610 = shalt.err (!%p607_p4)
}
  0x2d   :  { %s611_s3 = scalar_lea.vmem %s27_s15, 128  ;;  %p616_p6 = scmp.lt.s32.totalorder %s27_s15, %s27_s15 }
  0x2e   :  { %p612_p5 = scmp.ne.s32.totalorder %s27_s15, %s611_s3  ;;  %p617_p7 = scmp.lt.s32.totalorder %s611_s3, %s611_s3 }
  0x30   :  { %p618_p8 = por %p617_p7, %p616_p6 }
  0x32   :  { %p619_p9 = pnand %p618_p8, %p612_p5 }
  0x34   :  { %622 = shalt.err (!%p619_p9)
}
  0x35   :  { %29 = dma.hbm_to_vmem [thread:$0]  %s916_s0, 128, %s27_s15, [#allocation3]  }
  0x36   :  { %s623_s28 = scalar_lea.hbm %s918_s2, 128 }
  0x37   :  { %p624_p10 = scmp.ne.s32.totalorder %s918_s2, %s623_s28  ;;  %p627_p11 = scmp.lt.u32.totalorder %s623_s28, %s918_s2 }
  0x39   :  { %p629_p12 = pnand %p627_p11, %p624_p10 }
  0x3b   :  { %632 = shalt.err (!%p629_p12)
}
  0x3c   :  { %s633_s14 = scalar_lea.vmem %s47_s17, 128  ;;  %p638_p0 = scmp.lt.s32.totalorder %s47_s17, %s47_s17 }
  0x3d   :  { %p634_p13 = scmp.ne.s32.totalorder %s47_s17, %s633_s14  ;;  %p639_p1 = scmp.lt.s32.totalorder %s633_s14, %s633_s14 }
  0x3f   :  { %p640_p2 = por %p639_p1, %p638_p0 }
  0x41   :  { %p641_p3 = pnand %p640_p2, %p634_p13 }
  0x43   :  { %644 = shalt.err (!%p641_p3)
}
  0x44   :  { %49 = dma.hbm_to_vmem [thread:$0]  %s918_s2, 128, %s47_s17, [#allocation6]  }
  0x45   :  { %s727_s16 = smov [#allocation10]   ;;  %s728_s19 = smov [#allocation11]  }
  0x46   :  { %s67_s18 = sshll.u32 %s727_s16, 4  ;;  %s79_s20 = sshll.u32 %s728_s19, 4  ;;  %s68_s18 = int_to_ptr.vmem [resolvable:$true] %s67_s18  ;;  %s843_s20 = int_to_ptr.vmem [resolvable:$true] %s79_s20 }
  0x47   :  { %s645_s23 = scalar_lea.hbm %s920_s4, 1536 }
  0x48   :  { %p646_p4 = scmp.ne.s32.totalorder %s920_s4, %s645_s23  ;;  %p649_p5 = scmp.lt.u32.totalorder %s645_s23, %s920_s4 }
  0x4a   :  { %p651_p6 = pnand %p649_p5, %p646_p4 }
  0x4c   :  { %654 = shalt.err (!%p651_p6)
}
  0x4d   :  { %s655_s2 = scalar_lea.vmem %s68_s18, 1536  ;;  %p660_p8 = scmp.lt.s32.totalorder %s68_s18, %s68_s18 }
  0x4e   :  { %p656_p7 = scmp.ne.s32.totalorder %s68_s18, %s655_s2  ;;  %p661_p9 = scmp.lt.s32.totalorder %s655_s2, %s655_s2 }
  0x50   :  { %p662_p10 = por %p661_p9, %p660_p8 }
  0x52   :  { %p663_p11 = pnand %p662_p10, %p656_p7 }
  0x54   :  { %666 = shalt.err (!%p663_p11)
}
  0x55   :  { %73 = dma.hbm_to_vmem [thread:$0]  %s920_s4, 1536, %s68_s18, [#allocation9], %s723_s1, %s723_s1, %s724_s10  }
  0x56   :  { %s667_s29 = scalar_lea.hbm %s921_s5, 512 }
  0x57   :  { %p668_p12 = scmp.ne.s32.totalorder %s921_s5, %s667_s29  ;;  %p671_p13 = scmp.lt.u32.totalorder %s667_s29, %s921_s5 }
  0x59   :  { %p673_p0 = pnand %p671_p13, %p668_p12 }
  0x5b   :  { %676 = shalt.err (!%p673_p0)
}
  0x5c   :  { %s677_s0 = scalar_lea.vmem %s843_s20, 512  ;;  %p682_p2 = scmp.lt.s32.totalorder %s843_s20, %s843_s20 }
  0x5d   :  { %p678_p1 = scmp.ne.s32.totalorder %s843_s20, %s677_s0  ;;  %p683_p3 = scmp.lt.s32.totalorder %s677_s0, %s677_s0 }
  0x5f   :  { %p684_p4 = por %p683_p3, %p682_p2 }
  0x61   :  { %p685_p5 = pnand %p684_p4, %p678_p1 }
  0x63   :  { %688 = shalt.err (!%p685_p5)
}
  0x64   :  { %85 = dma.hbm_to_vmem [thread:$0]  %s921_s5, 512, %s843_s20, [#allocation12], %s723_s1, %s723_s1, %s724_s10  }
  0x65   :  { %711 = dma.done.wait [#allocation3], 128  }
  0x66   :  { %712 = vsyncadd [#allocation3], 4294967168 }
  0x67   :  { %713 = dma.done.wait [#allocation6], 256  }
  0x68   :  { %714 = vsyncadd [#allocation6], 4294967040 }
  0x69   :  { %715 = dma.done.wait [#allocation9], 2048  }
  0x6a   :  { %716 = vsyncadd [#allocation9], 4294965248 }
  0x6b   :  { %717 = dma.done.wait [#allocation12], 512  }
  0x6c   :  { %718 = vsyncadd [#allocation12], 4294966784  ;;  %v729_v0 = vmov 0.0|0.0   ;;  %vm730_vm0 = vmmov 0   ;;  %v731_v1 = vmov 0.0   ;;  %v111_v2 = vld [vmem:[#allocation8] sm:$0xff] }
  0x6d   :  { %505 = vmatprep.subr.bf16.mxu1 %v729_v0  ;;  %464 = vmatprep.mubr.msk.f32.mxu1 %vm730_vm0, %v731_v1  ;;  %v112_v3 = vld [vmem:[#allocation8 + $0x8] sm:$0xff]  ;;  %v113_v4 = vld [vmem:[#allocation8 + $0x10] sm:$0xff]  ;;  %v114_v6 = vld [vmem:[#allocation8 + $0x18] sm:$0xff]  ;;  %vm115_vm1 = vcmask 261120   ;;  %vm278_vm2 = vcmask 785408   ;;  %s732_s10 = smov 64  }
  0x6e   :  { %517 = vmatprep.subr.bf16.mxu0 %v729_v0  ;;  %502 = vmatprep.mubr.msk.f32.mxu0 %vm730_vm0, %v731_v1  ;;  %v506_v5 = vpack.c.bf16 %v112_v3, %v111_v2  ;;  %v189_v7 = vld [vmem:[#allocation10] sm:$0xff]  ;;  %v190_v8 = vld [vmem:[#allocation10 + $0x8] sm:$0xff]  ;;  %v191_v9 = vld [vmem:[#allocation10 + $0x10] sm:$0xff]  ;;  %v509_v11 = vpack.c.bf16 %v114_v6, %v113_v4  ;;  %s733_s16 = smov 96   ;;  %s734_s19 = smov [#allocation13]  }
  0x6f   :  { %v192_v10 = vld [vmem:[#allocation10 + $0x18] sm:$0xff]  ;;  %v518_v12 = vpack.c.bf16 %v190_v8, %v189_v7  ;;  %v201_v13 = vld [vmem:[#allocation11] sm:$0xff]  ;;  %v202_v14 = vld [vmem:[#allocation11 + $0x8] sm:$0xff]  ;;  %s413_s20 = sshll.u32 %s734_s19, 4  ;;  %s414_s20 = int_to_ptr.vmem [resolvable:$true] %s413_s20 }
  0x70   :  { %507 = vmatpush3.bf16.msra.mxu1 %v506_v5  ;;  %v521_v15 = vpack.c.bf16 %v192_v10, %v191_v9  ;;  %v193_v16 = vld [vmem:[#allocation10 + $0x20] sm:$0xff]  ;;  %v194_v17 = vld [vmem:[#allocation10 + $0x28] sm:$0xff]  ;;  %v512_v19 = vpack.c.bf16 %v202_v14, %v201_v13  ;;  %v203_v20 = vld [vmem:[#allocation11 + $0x10] sm:$0xff]  ;;  %s689_s21 = scalar_lea.vmem %s414_s20, 128  ;;  %p694_p7 = scmp.lt.s32.totalorder %s414_s20, %s414_s20 }
  0x71   :  { %508 = vmatprep.subr.bf16.mxu1 %v729_v0  ;;  %519 = vmatpush3.bf16.msra.mxu0 %v518_v12  ;;  %v108_v18 = vld [vmem:[#allocation2] sm:$0xff]  ;;  %v204_v21 = vld [vmem:[#allocation11 + $0x18] sm:$0xff]  ;;  %v524_v22 = vpack.c.bf16 %v194_v17, %v193_v16  ;;  %v195_v23 = vld [vmem:[#allocation10 + $0x30] sm:$0xff]  ;;  %p690_p6 = scmp.ne.s32.totalorder %s414_s20, %s689_s21  ;;  %p695_p8 = scmp.lt.s32.totalorder %s689_s21, %s689_s21 }
  0x72   :  { %520 = vmatprep.subr.bf16.mxu0 %v729_v0  ;;  %v196_v24 = vld [vmem:[#allocation10 + $0x38] sm:$0xff]  ;;  %v515_v25 = vpack.c.bf16 %v204_v21, %v203_v20  ;;  %v197_v27 = vld [vmem:[#allocation10 + $0x40] sm:$0xff]  ;;  %v198_v28 = vld [vmem:[#allocation10 + $0x48] sm:$0xff] }
  0x73   :  { %v527_v26 = vpack.c.bf16 %v196_v24, %v195_v23  ;;  %v530_v29 = vpack.c.bf16 %v198_v28, %v197_v27  ;;  %v199_v30 = vld [vmem:[#allocation10 + $0x50] sm:$0xff]  ;;  %v200_v31 = vld [vmem:[#allocation10 + $0x58] sm:$0xff]  ;;  %p696_p9 = por %p695_p8, %p694_p7 }
  0x74   :  { %510 = vmatpush3.bf16.msra.mxu1 %v509_v11  ;;  %v533_v32 = vpack.c.bf16 %v200_v31, %v199_v30  ;;  %v109_v33 = vld [vmem:[#allocation5] sm:$0xff]  ;;  %v430_v39 = vld [vmem:[%s922_s6] ss:$0 sm:$0xff] }
  0x75   :  { %511 = vmatprep.subr.bf16.mxu1 %v729_v0  ;;  %522 = vmatpush3.bf16.msra.mxu0 %v521_v15  ;;  %v110_v50 = vld [vmem:[#allocation7] sm:$0xff]  ;;  %p697_p10 = pnand %p696_p9, %p690_p6 }
  0x76   :  { %523 = vmatprep.subr.bf16.mxu0 %v729_v0  ;;  %v432_v51 = vld [vmem:[%s923_s7] ss:$0 sm:$0xff] }
  0x77   :  { %465 = vmatmul.mubr.msk.f32.vlgmr.msra.gmra.mrb[0].mxu1 %vm115_vm1, %v108_v18  ;;  %v374_v52 = vmul.f32 %v432_v51, %v110_v50 }
  0x78   :  { %513 = vmatpush3.bf16.msra.mxu1 %v512_v19  ;;  %475 = vmatprep.mubr.msk.f32.mxu1 %vm730_vm0, %v731_v1 }
  0x79   :  { %514 = vmatprep.subr.bf16.mxu1 %v729_v0  ;;  %525 = vmatpush3.bf16.msra.mxu0 %v524_v22 }
  0x7a   :  { %526 = vmatprep.subr.bf16.mxu0 %v729_v0 }
  0x7c   :  { %516 = vmatpush3.bf16.msra.mxu1 %v515_v25 }
  0x7d   :  { %528 = vmatpush3.bf16.msra.mxu0 %v527_v26 }
  0x7e   :  { %529 = vmatprep.subr.bf16.mxu0 %v729_v0 }
  0x7f   :  { %476 = vmatmul.mubr.msk.f32.vlgmr.msra.gmra.mrb[2].mxu1 %vm115_vm1, %v109_v33 }
  0x81   :  { %531 = vmatpush3.bf16.msra.mxu0 %v530_v29 }
  0x82   :  { %532 = vmatprep.subr.bf16.mxu0 %v729_v0 }
  0x85   :  { %534 = vmatpush3.bf16.msra.mxu0 %v533_v32 }
 0x14a   :  { %v185_v34 = vpop.f32.mrb[0].mxu1 }
 0x14b   :  { %v466_v35 = vpop.f32.mrb[1].mxu1  ;;  %503 = vmatmul.mubr.msk.f32.vlgmr.msra.gmra.mrb[0].mxu0 %vm278_vm2, %v185_v34  ;;  %392 = vst.msk [vmem:[#allocation13] sm:$0xff] %vm278_vm2, %v185_v34 }
 0x152   :  { %v274_v36 = vpop.f32.mrb[2].mxu1 }
 0x153   :  { %v477_v37 = vpop.f32.mrb[3].mxu1 }
 0x21e   :  { %v348_v38 = vpop.f32.mrb[0].mxu0 }
 0x21f   :  { %v349_v40 = vadd.f32 %v348_v38, %v274_v36  ;;  %v504_v41 = vpop.f32.mrb[1].mxu0 }
 0x221   :  { %v359_v42 = vadd.f32 %v430_v39, %v349_v40 }
 0x223   :  { %549 = vtanh.f32 %v359_v42  ;;  %v431_v44 = vmul.f32 -1.442695, %v359_v42 }
 0x225   :  { %551 = vpow2.f32 %v431_v44 }
 0x22d   :  { %v550_v43 = vpop.eup %549 }
 0x22e   :  { %377 = vrot.lane.b32.xlu0 %v550_v43, %s732_s10 }
 0x22f   :  { %v552_v45 = vpop.eup %551 }
 0x230   :  { %v363_v46 = vadd.f32 1.0, %v552_v45 }
 0x232   :  { %553 = vrcp.f32 %v363_v46 }
 0x23c   :  { %v554_v47 = vpop.eup %553 }
 0x23d   :  { %v375_v53 = vmul.f32 %v554_v47, %v374_v52 }
 0x2a0   :  { %v378_v48 = vpop.permute.xlu0 %377 }
 0x2a1   :  { %v380_v49 = vmul.f32 %v554_v47, %v378_v48 }
 0x2a3   :  { %382 = vrot.lane.b32.xlu0 %v380_v49, %s733_s16 }
 0x315   :  { %v383_v54 = vpop.permute.xlu0 %382 }
 0x316   :  { %v385_v55 = vadd.f32 %v383_v54, %v375_v53 }
 0x318   :  { %555 = vtanh.f32 %v385_v55 }
 0x322   :  { %v556_v56 = vpop.eup %555 }
 0x323   :  { %388 = vrot.lane.b32.xlu1 %v556_v56, %s732_s10 }
 0x327   :  { %394 = vrot.lane.b32.xlu1 %v385_v55, %s732_s10 }
 0x328   :  { %700 = shalt.err (!%p697_p10)
}
 0x329   :  { %s701_s23 = scalar_lea.hbm %s925_s9, 128 }
 0x32a   :  { %p702_p11 = scmp.ne.s32.totalorder %s925_s9, %s701_s23  ;;  %p705_p12 = scmp.lt.u32.totalorder %s701_s23, %s925_s9 }
 0x32c   :  { %p707_p13 = pnand %p705_p12, %p702_p11 }
 0x32e   :  { %710 = shalt.err (!%p707_p13)
}
 0x32f   :  { %416 = dma.vmem_to_hbm [thread:$0]  %s414_s20, 128, %s925_s9, [#allocation4]  }
 0x395   :  { %v389_v57 = vpop.permute.xlu1 %388 }
 0x396   :  { %v391_v58 = vmul.f32 %v554_v47, %v389_v57 }
 0x398   :  { %397 = vrot.lane.b32.xlu0 %v391_v58, %s732_s10 }
 0x399   :  { %v395_v59 = vpop.permute.xlu1 %394 }
 0x39a   :  { %399 = vrot.lane.b32.xlu1 %v395_v59, %s732_s10 }
 0x40a   :  { %v398_v60 = vpop.permute.xlu0 %397 }
 0x40b   :  { %403 = vst.msk [vmem:[%s924_s8] sm:$0xff] %vm115_vm1, %v398_v60 }
 0x40c   :  { %v400_v61 = vpop.permute.xlu1 %399 }
 0x40d   :  { %404 = vst.msk [vmem:[%s924_s8 + $0x8] sm:$0xff] %vm115_vm1, %v400_v61 }
 0x40e   :  { %719 = dma.done.wait [#allocation4], 128  }
 0x40f   :  { %720 = vsyncadd [#allocation4], 4294967168 }
 0x410   :  { %422 = vsyncpa [#allocation3], 1 }
 0x411   :  { %423 = vsyncpa [#allocation6], 1 }
 0x412   :  { %424 = vsyncpa [#allocation9], 1 }
 0x413   :  { %425 = vsyncpa [#allocation12], 1 }
 0x414   :  { %426 = vsyncpa [#allocation4], 1 }

</bundles_post_ra>
